<compile_context>
chip_gen: v5e
topology: v5e:2x2
jax: 0.10.0
libtpu: 0.0.40
codegen_flags: <defaults>
</compile_context>

<pallas_src>
import functools
import math

import jax
import jax.numpy as jnp
from jax.experimental import pallas as pl
from jax.experimental.pallas import tpu as pltpu

NEG_SLOPE = 0.01  # nn.LeakyReLU default
BN_EPS = 1e-5


def _leaky(v):
    return jnp.where(v >= 0, v, NEG_SLOPE * v)


def ghost_kernel(x_ref, w1_ref, b1_ref, wd_ref, b2_ref, o_ref, *,
                 n_primary, n_cheap):
    # x_ref: (Bt, Cin, L)   o_ref: (Bt, Cout, L)
    x = x_ref[...].astype(jnp.float32)
    w1 = w1_ref[...]                                   # (Cinit, Cin), BN folded
    bt = x.shape[0]
    cinit = w1.shape[0]
    length = x.shape[-1]

    # ----- primary conv (1x1): batched channel matmul, no transposes -----
    w1b = jnp.broadcast_to(w1, (bt, cinit, w1.shape[1]))
    x1 = jnp.einsum("boc,bcl->bol", w1b, x,
                    preferred_element_type=jnp.float32)          # (Bt, Cinit, L)
    x1 = _leaky(x1 + b1_ref[...])                                # BN bias + act

    o_ref[:, :n_primary, :] = x1[:, :n_primary, :].astype(o_ref.dtype)

    if n_cheap > 0:
        # ----- cheap op: depthwise conv, k=3, pad=1, along the lane (L) axis --
        x1c = x1[:, :n_cheap, :]                       # ratio=2 channel mapping
        zero_col = jnp.zeros((bt, n_cheap, 1), dtype=x1c.dtype)
        x_prev = jnp.concatenate([zero_col, x1c[:, :, :length - 1]], axis=2)
        x_next = jnp.concatenate([x1c[:, :, 1:], zero_col], axis=2)

        wd = wd_ref[...]                               # (n_cheap, 3), BN folded
        x2 = wd[:, 0:1] * x_prev + wd[:, 1:2] * x1c + wd[:, 2:3] * x_next
        x2 = _leaky(x2 + b2_ref[...])
        o_ref[:, n_primary:, :] = x2.astype(o_ref.dtype)


def ghost_module(x, w1, scale1, bias1, wd, scale2, bias2, out_channels, *,
                 target_block_bytes=2 << 20):
    """x: (B, Cin, L) float32.  Returns (B, out_channels, L)."""
    B, Cin, L = x.shape
    Cinit = w1.shape[0]
    Cnew, dw_taps = wd.shape
    if Cnew != Cinit:
        # TODO(synk): general ratio > 2 group->channel mapping not implemented
        # (default ratio=2, where new_channels == init_channels, is covered).
        raise NotImplementedError("only ratio=2 (Cnew == Cinit) is supported")

    n_primary = min(Cinit, out_channels)
    n_cheap = out_channels - n_primary     # depthwise channels surviving the crop

    # Fold inference-mode BN scales into the conv weights (host side, once).
    w1f = (w1 * scale1).astype(jnp.float32)                    # (Cinit, Cin)
    b1 = bias1.astype(jnp.float32)                             # (Cinit, 1)
    if n_cheap > 0:
        wdf = (wd * scale2)[:n_cheap].astype(jnp.float32)      # (n_cheap, 3)
        b2 = bias2[:n_cheap].astype(jnp.float32)               # (n_cheap, 1)
    else:
        wdf = jnp.zeros((1, dw_taps), jnp.float32)             # dummy, unused
        b2 = jnp.zeros((1, 1), jnp.float32)

    # ----- tile selection: ~target_block_bytes of HBM I/O per grid step,
    # and keep >= 2 grid steps when possible (megacore split on v7x).
    bytes_per_batch = (Cin + out_channels) * L * x.dtype.itemsize
    Bt = max(1, min(B, target_block_bytes // max(bytes_per_batch, 1)))
    if B >= 2:
        Bt = min(Bt, pl.cdiv(B, 2))
    Bp = pl.cdiv(B, Bt) * Bt
    if Bp != B:
        x = jnp.pad(x, ((0, Bp - B), (0, 0), (0, 0)))
    n_tiles = Bp // Bt

    out = pl.pallas_call(
        functools.partial(ghost_kernel, n_primary=n_primary, n_cheap=n_cheap),
        out_shape=jax.ShapeDtypeStruct((Bp, out_channels, L), x.dtype),
        grid_spec=pltpu.PrefetchScalarGridSpec(
            num_scalar_prefetch=0,
            grid=(n_tiles,),
            in_specs=[
                pl.BlockSpec((Bt, Cin, L), lambda i: (i, 0, 0)),
                pl.BlockSpec(w1f.shape, lambda i: (0, 0)),
                pl.BlockSpec(b1.shape, lambda i: (0, 0)),
                pl.BlockSpec(wdf.shape, lambda i: (0, 0)),
                pl.BlockSpec(b2.shape, lambda i: (0, 0)),
            ],
            out_specs=pl.BlockSpec((Bt, out_channels, L), lambda i: (i, 0, 0)),
        ),
        compiler_params=pltpu.CompilerParams(
            dimension_semantics=("parallel",)),
    )(x, w1f, b1, wdf, b2)

    return out[:B]


def ghost_module_ref(x, w1, scale1, bias1, wd, scale2, bias2, out_channels):
    """Pure-JAX reference with identical semantics."""
    x1 = jnp.einsum("oc,bcl->bol", w1, x)
    x1 = _leaky(x1 * scale1[None, :, :] + bias1[None, :, :])
    xp = jnp.pad(x1, ((0, 0), (0, 0), (1, 1)))
    x2 = (wd[None, :, 0:1] * xp[:, :, :-2]
          + wd[None, :, 1:2] * xp[:, :, 1:-1]
          + wd[None, :, 2:3] * xp[:, :, 2:])
    x2 = _leaky(x2 * scale2[None, :, :] + bias2[None, :, :])
    out = jnp.concatenate([x1, x2], axis=1)
    return out[:, :out_channels, :]


def _folded_bn_params(key, c):
    k1, k2, k3, k4 = jax.random.split(key, 4)
    gamma = 1.0 + 0.1 * jax.random.normal(k1, (c,), dtype=jnp.float32)
    beta = 0.1 * jax.random.normal(k2, (c,), dtype=jnp.float32)
    mean = 0.1 * jax.random.normal(k3, (c,), dtype=jnp.float32)
    var = jnp.abs(1.0 + 0.1 * jax.random.normal(k4, (c,), dtype=jnp.float32))
    scale = (gamma / jnp.sqrt(var + BN_EPS)).reshape(c, 1)
    bias = (beta - mean * gamma / jnp.sqrt(var + BN_EPS)).reshape(c, 1)
    return scale, bias


def _run_case(key, B, in_channels, out_channels, L, ratio=2, dw_size=3):
    init_channels = math.ceil(out_channels / ratio)
    new_channels = init_channels * (ratio - 1)
    keys = jax.random.split(key, 5)
    x = jax.random.normal(keys[0], (B, in_channels, L), dtype=jnp.float32)
    # primary conv weight: torch (init, in, 1) -> squeeze k
    w1 = jax.random.normal(keys[1], (init_channels, in_channels),
                           dtype=jnp.float32) * 0.5
    # depthwise conv weight: torch (new, 1, 3) -> squeeze group dim
    wd = jax.random.normal(keys[2], (new_channels, dw_size),
                           dtype=jnp.float32) * 0.5
    scale1, bias1 = _folded_bn_params(keys[3], init_channels)
    scale2, bias2 = _folded_bn_params(keys[4], new_channels)

    out = ghost_module(x, w1, scale1, bias1, wd, scale2, bias2, out_channels)
    out = jax.block_until_ready(out)
    ref = ghost_module_ref(x, w1, scale1, bias1, wd, scale2, bias2, out_channels)
    assert out.shape == (B, out_channels, L), out.shape
    err = float(jnp.max(jnp.abs(out - ref)))
    assert jnp.allclose(out, ref, atol=1e-5, rtol=1e-5), err


if __name__ == "__main__":
    root = jax.random.PRNGKey(0)
    k1, k2 = jax.random.split(root)
    # GhostModule defaults: in=4, out=8, kernel_size=1, ratio=2, dw_size=3.
    _run_case(k1, B=2, in_channels=4, out_channels=8, L=16)
    # Exercises the multi-tile + padded-batch path (B=3 -> Bt=2, Bp=4).
    _run_case(k2, B=3, in_channels=6, out_channels=10, L=24)
    print("KERNEL_OK")
</pallas_src>

<mosaic_0001>
module attributes {stable_mosaic.version = 11 : i64} {
  func.func @ghost_kernel(%arg0: i32, %arg1: memref<1x4x16xf32, #tpu.memory_space<vmem>>, %arg2: memref<4x4xf32, #tpu.memory_space<vmem>>, %arg3: memref<4x1xf32, #tpu.memory_space<vmem>>, %arg4: memref<4x3xf32, #tpu.memory_space<vmem>>, %arg5: memref<4x1xf32, #tpu.memory_space<vmem>>, %arg6: memref<1x8x16xf32, #tpu.memory_space<vmem>>) attributes {dimension_semantics = [#tpu.dimension_semantics<parallel>], iteration_bounds = array<i64: 2>, scalar_prefetch = 0 : i64, scratch_operands = 0 : i64, tpu.core_type = #tpu.core_type<tc>, window_params = [{transform_indices = @transform_0, window_bounds = array<i64: 1, 4, 16>}, {pipeline_mode = #tpu.pipeline_mode<synchronous>, transform_indices = @transform_1, window_bounds = array<i64: 4, 4>}, {pipeline_mode = #tpu.pipeline_mode<synchronous>, transform_indices = @transform_2, window_bounds = array<i64: 4, 1>}, {pipeline_mode = #tpu.pipeline_mode<synchronous>, transform_indices = @transform_3, window_bounds = array<i64: 4, 3>}, {pipeline_mode = #tpu.pipeline_mode<synchronous>, transform_indices = @transform_4, window_bounds = array<i64: 4, 1>}, {transform_indices = @transform_5, window_bounds = array<i64: 1, 8, 16>}]} {
    %c0 = arith.constant 0 : index
    %c0_0 = arith.constant 0 : index
    %c0_1 = arith.constant 0 : index
    %0 = vector.load %arg1[%c0, %c0_0, %c0_1] : memref<1x4x16xf32, #tpu.memory_space<vmem>>, vector<1x4x16xf32>
    %c0_2 = arith.constant 0 : index
    %c0_3 = arith.constant 0 : index
    %1 = vector.load %arg2[%c0_2, %c0_3] : memref<4x4xf32, #tpu.memory_space<vmem>>, vector<4x4xf32>
    %2 = vector.shape_cast %1 : vector<4x4xf32> to vector<1x4x4xf32>
    "tpu.trace_start"() <{level = 10 : i32, message = "boc,bcl->bol"}> : () -> ()
    %cst = arith.constant dense<0.000000e+00> : vector<1x4x16xf32>
    %3 = tpu.matmul %2, %0, %cst {dimension_numbers = #tpu.dot_dimension_numbers<[2], [1], [1], [2], [0, 0, 0, 1, 1, 2], [0], [0]>} : vector<1x4x4xf32>, vector<1x4x16xf32>, vector<1x4x16xf32> -> vector<1x4x16xf32>
    "tpu.trace_stop"() : () -> ()
    %c0_4 = arith.constant 0 : index
    %c0_5 = arith.constant 0 : index
    %4 = vector.load %arg3[%c0_4, %c0_5] : memref<4x1xf32, #tpu.memory_space<vmem>>, vector<4x1xf32>
    %5 = vector.shape_cast %4 : vector<4x1xf32> to vector<1x4x1xf32>
    %6 = vector.broadcast %5 : vector<1x4x1xf32> to vector<1x4x16xf32>
    %7 = arith.addf %3, %6 : vector<1x4x16xf32>
    %cst_6 = arith.constant 0.000000e+00 : f32
    %8 = vector.broadcast %cst_6 : f32 to vector<1x4x16xf32>
    %9 = arith.cmpf oge, %7, %8 : vector<1x4x16xf32>
    %cst_7 = arith.constant 0.00999999977 : f32
    %10 = vector.broadcast %cst_7 : f32 to vector<1x4x16xf32>
    %11 = arith.mulf %10, %7 : vector<1x4x16xf32>
    %12 = arith.select %9, %7, %11 : vector<1x4x16xi1>, vector<1x4x16xf32>
    %c0_8 = arith.constant 0 : index
    %c0_9 = arith.constant 0 : index
    %c0_10 = arith.constant 0 : index
    %13 = vector.load %arg6[%c0_8, %c0_9, %c0_10] : memref<1x8x16xf32, #tpu.memory_space<vmem>>, vector<1x4x16xf32>
    tpu.vector_store %arg6[%c0_8, %c0_9, %c0_10], %12 {strides = array<i32>} : memref<1x8x16xf32, #tpu.memory_space<vmem>>, vector<1x4x16xf32>,
    %cst_11 = arith.constant 0.000000e+00 : f32
    %14 = vector.broadcast %cst_11 : f32 to vector<1x4x1xf32>
    %15 = vector.extract_strided_slice %12 {offsets = [0, 0, 0], sizes = [1, 4, 15], strides = [1, 1, 1]} : vector<1x4x16xf32> to vector<1x4x15xf32>
    %16 = tpu.concatenate %14, %15 in 2 : vector<1x4x1xf32>, vector<1x4x15xf32> -> vector<1x4x16xf32>
    %17 = vector.extract_strided_slice %12 {offsets = [0, 0, 1], sizes = [1, 4, 15], strides = [1, 1, 1]} : vector<1x4x16xf32> to vector<1x4x15xf32>
    %18 = tpu.concatenate %17, %14 in 2 : vector<1x4x15xf32>, vector<1x4x1xf32> -> vector<1x4x16xf32>
    %c0_12 = arith.constant 0 : index
    %c0_13 = arith.constant 0 : index
    %19 = vector.load %arg4[%c0_12, %c0_13] : memref<4x3xf32, #tpu.memory_space<vmem>>, vector<4x3xf32>
    %20 = vector.extract_strided_slice %19 {offsets = [0, 0], sizes = [4, 1], strides = [1, 1]} : vector<4x3xf32> to vector<4x1xf32>
    %21 = vector.shape_cast %20 : vector<4x1xf32> to vector<1x4x1xf32>
    %22 = vector.broadcast %21 : vector<1x4x1xf32> to vector<1x4x16xf32>
    %23 = arith.mulf %22, %16 : vector<1x4x16xf32>
    %24 = vector.extract_strided_slice %19 {offsets = [0, 1], sizes = [4, 1], strides = [1, 1]} : vector<4x3xf32> to vector<4x1xf32>
    %25 = vector.shape_cast %24 : vector<4x1xf32> to vector<1x4x1xf32>
    %26 = vector.broadcast %25 : vector<1x4x1xf32> to vector<1x4x16xf32>
    %27 = arith.mulf %26, %12 : vector<1x4x16xf32>
    %28 = arith.addf %23, %27 : vector<1x4x16xf32>
    %29 = vector.extract_strided_slice %19 {offsets = [0, 2], sizes = [4, 1], strides = [1, 1]} : vector<4x3xf32> to vector<4x1xf32>
    %30 = vector.shape_cast %29 : vector<4x1xf32> to vector<1x4x1xf32>
    %31 = vector.broadcast %30 : vector<1x4x1xf32> to vector<1x4x16xf32>
    %32 = arith.mulf %31, %18 : vector<1x4x16xf32>
    %33 = arith.addf %28, %32 : vector<1x4x16xf32>
    %c0_14 = arith.constant 0 : index
    %c0_15 = arith.constant 0 : index
    %34 = vector.load %arg5[%c0_14, %c0_15] : memref<4x1xf32, #tpu.memory_space<vmem>>, vector<4x1xf32>
    %35 = vector.shape_cast %34 : vector<4x1xf32> to vector<1x4x1xf32>
    %36 = vector.broadcast %35 : vector<1x4x1xf32> to vector<1x4x16xf32>
    %37 = arith.addf %33, %36 : vector<1x4x16xf32>
    %cst_16 = arith.constant 0.000000e+00 : f32
    %38 = vector.broadcast %cst_16 : f32 to vector<1x4x16xf32>
    %39 = arith.cmpf oge, %37, %38 : vector<1x4x16xf32>
    %cst_17 = arith.constant 0.00999999977 : f32
    %40 = vector.broadcast %cst_17 : f32 to vector<1x4x16xf32>
    %41 = arith.mulf %40, %37 : vector<1x4x16xf32>
    %42 = arith.select %39, %37, %41 : vector<1x4x16xi1>, vector<1x4x16xf32>
    %c0_18 = arith.constant 0 : index
    %c4 = arith.constant 4 : index
    %c0_19 = arith.constant 0 : index
    %43 = vector.load %arg6[%c0_18, %c4, %c0_19] : memref<1x8x16xf32, #tpu.memory_space<vmem>>, vector<1x4x16xf32>
    tpu.vector_store %arg6[%c0_18, %c4, %c0_19], %42 {strides = array<i32>} : memref<1x8x16xf32, #tpu.memory_space<vmem>>, vector<1x4x16xf32>,
    return
  }
  func.func @transform_0(%arg0: i32) -> (i32, i32, i32) {
    %c0_i32 = arith.constant 0 : i32
    %c0_i32_0 = arith.constant 0 : i32
    %c0_i32_1 = arith.constant 0 : i32
    return %arg0, %c0_i32, %c0_i32_0 : i32, i32, i32
  }
  func.func @transform_1(%arg0: i32) -> (i32, i32) {
    %c0_i32 = arith.constant 0 : i32
    %c0_i32_0 = arith.constant 0 : i32
    %c0_i32_1 = arith.constant 0 : i32
    return %c0_i32, %c0_i32_0 : i32, i32
  }
  func.func @transform_2(%arg0: i32) -> (i32, i32) {
    %c0_i32 = arith.constant 0 : i32
    %c0_i32_0 = arith.constant 0 : i32
    %c0_i32_1 = arith.constant 0 : i32
    return %c0_i32, %c0_i32_0 : i32, i32
  }
  func.func @transform_3(%arg0: i32) -> (i32, i32) {
    %c0_i32 = arith.constant 0 : i32
    %c0_i32_0 = arith.constant 0 : i32
    %c0_i32_1 = arith.constant 0 : i32
    return %c0_i32, %c0_i32_0 : i32, i32
  }
  func.func @transform_4(%arg0: i32) -> (i32, i32) {
    %c0_i32 = arith.constant 0 : i32
    %c0_i32_0 = arith.constant 0 : i32
    %c0_i32_1 = arith.constant 0 : i32
    return %c0_i32, %c0_i32_0 : i32, i32
  }
  func.func @transform_5(%arg0: i32) -> (i32, i32, i32) {
    %c0_i32 = arith.constant 0 : i32
    %c0_i32_0 = arith.constant 0 : i32
    %c0_i32_1 = arith.constant 0 : i32
    return %arg0, %c0_i32, %c0_i32_0 : i32, i32, i32
  }
}

</mosaic_0001>

<bundles_post_ra>
// kernel: tpu_custom_call.1
= control target key start
LH: loop header
LB: loop body
LE: loop exit
PB: predicated region body
PF: predicated region fallthrough
CT: control target
= control target key end

     0   :  { %10 = vsyncpa [#allocation3], 0  ;;  %s805_s0 = inlined_call_operand.vmem [shape: f32[2,4,16], index: 0, kind: input, shape index: {}]   ;;  %s806_s1 = inlined_call_operand.hbm [shape: f32[4,4], index: 1, kind: input, shape index: {}]   ;;  %s807_s2 = inlined_call_operand.vmem [shape: f32[4,1], index: 2, kind: input, shape index: {}]   ;;  %s808_s3 = inlined_call_operand.hbm [shape: f32[4,3], index: 3, kind: input, shape index: {}]   ;;  %s809_s4 = inlined_call_operand.vmem [shape: f32[4,1], index: 4, kind: input, shape index: {}]   ;;  %s810_s5 = inlined_call_operand.hbm [shape: f32[2,8,16], index: 5, kind: output, shape index: {}]  }
   0x1   :  { %11 = vsyncpa [#allocation6], 0 }
   0x2   :  { %12 = vsyncpa [#allocation4], 0 }
   0x3   :  { %14 = vsyncpa [#allocation4 + $0x1], 0  ;;  %s683_s18 = smov 0   ;;  %s685_s19 = smov 0  }
   0x4   :  { %s687_s20 = smov 0   ;;  %s689_s21 = smov 0  }
   0x5 LB: > { %s704_s22 = sadd.s32 4294967295, %s644_s21   ;;  %s429_s23 = sadd.s32 4294967294, %s644_s21   ;;  %s644_s21 = sphi %s689_s21, %s817_s21   ;;  %s640_s20 = sphi %s687_s20, %s816_s20   ;;  %s636_s19 = sphi %s685_s19, %s815_s19   ;;  %s632_s18 = sphi %s683_s18, %s814_s18  }
   0x6   : > { %s708_s24 = sadd.s32 1, %s644_s21   ;;  %s137_s25 = sadd.s32 1, %s640_s20 }
   0x7   : > { %s134_s26 = ssub.s32 %s644_s21, %s708_s24  ;;  %p147_p0 = scmp.ne.s32.totalorder %s640_s20, %s636_s19 }
   0x8   : > { %p135_p1 = scmp.eq.s32.totalorder %s134_s26, 0  ;;  %p148_p2 = scmp.eq.s32.totalorder %s704_s22, 1 }
   0x9   : > { %p153_p3 = scmp.ne.s32.totalorder %s636_s19, %s632_s18  ;;  %p154_p4 = scmp.eq.s32.totalorder %s429_s23, 1 }
   0xa   : > { %s719_s27 = scalar_select %p135_p1, %s640_s20, %s137_s25  }
   0xb   : > { %p721_p5 = por %p148_p2, %p147_p0  ;;  %p725_p6 = por %p154_p4, %p153_p3 }
   0xc   : > { %p430_p7 = scmp.ge.s32.totalorder %s644_s21, 1  ;;  %p161_p8 = scmp.lt.s32.totalorder %s644_s21, 3 }
   0xd   : > { %p466_p9 = scmp.eq.s32.totalorder %s704_s22, 0  ;;  %s173_s8 = sshll.u32 %s806_s1, 4  ;;  %s174_s8 = int_to_ptr.hbm [resolvable:$true] %s173_s8 }
   0xe   : > { %p732_p10 = pnand %p430_p7, %p161_p8  ;;  %s646_s9 = smov [#allocation2]  }
   0xf   : > { %s175_s10 = sshll.u32 %s646_s9, 4  ;;  %s188_s13 = sshll.u32 %s808_s3, 4  ;;  %s176_s10 = int_to_ptr.vmem [resolvable:$true] %s175_s10  ;;  %s189_s13 = int_to_ptr.hbm [resolvable:$true] %s188_s13 }
  0x10   : > { %p455_p11 = pneg %p732_p10  ;;  %s647_s14 = smov [#allocation5]  }
  0x11   : > { %s190_s15 = sshll.u32 %s647_s14, 4  ;;  %213 = sbr.rel (%p732_p10) target bundleno = 295 (0x127), region = 40  ;;  %s191_s15 = int_to_ptr.vmem [resolvable:$true] %s190_s15 }
  0x12   : > { %p456_p12 = pnand %p466_p9, %p455_p11 }
  0x14   : > { %458 = dma.hbm_to_vmem [thread:$0]  (!%p456_p12), %s174_s8, 64, %s176_s10, [#allocation3]  }
  0x15   : > { %461 = dma.hbm_to_vmem [thread:$0]  (!%p456_p12), %s189_s13, 64, %s191_s15, [#allocation6]  }
  0x16   : > { %619 = dma.done.wait (%p466_p9), [#allocation3], 64  }
  0x17   : > { %621 = vsyncadd (%p466_p9), [#allocation3], 4294967232 }
  0x18   : > { %623 = dma.done.wait (%p466_p9), [#allocation6], 64  }
  0x19   : > { %625 = vsyncadd (%p466_p9), [#allocation6], 4294967232  ;;  %p246_p13 = scmp.lt.s32.totalorder %s704_s22, 1  ;;  %v648_v0 = vmov 0   ;;  %vm262_vm0 = vcmask 1043456   ;;  %vm258_vm1 = vcmask 31744  }
  0x1a   : > { %511 = vset.pattern.permute.xlu1 %v648_v0  ;;  %510 = vset.pattern.permute.xlu0 %v648_v0  ;;  %v251_v2 = vld [vmem:[#allocation2] sm:$0xf]  ;;  %v302_v3 = vld [vmem:[#allocation5] sm:$0xf]  ;;  %v649_v5 = vmov 1   ;;  %v650_v6 = vmov 2  }
  0x1b   : > { %s247_s16 = scalar_select %p246_p13, %s704_s22, 1  ;;  %305 = vperm.xlu1 %511, %v302_v3   ;;  %v252_v4 = vld [vmem:[%s807_s2] sm:$0xf]  ;;  %513 = vset.pattern.permute.xlu2 %v650_v6  ;;  %vm289_vm3 = vcmask 125952   ;;  %vm295_vm4 = vcmask 7168   ;;  %vm300_vm5 = vcmask 121856  }
  0x1c   : > { %255 = vperm.xlu0 %510, %v252_v4   ;;  %s243_s7 = sand.u32 1, %s636_s19   ;;  %s651_s9 = smov 127   ;;  %v321_v12 = vld [vmem:[%s809_s4] sm:$0xf] }
  0x1d   : > { %s438_s17 = sshll.u32 %s247_s16, 2  ;;  %s437_s8 = sshll.u32 %s243_s7, 3 }
  0x1e   : > { %s249_s26 = scalar_lea.vmem %s805_s0, %s438_s17  ;;  %s652_s10 = smov 1  }
  0x1f   : > { %v250_v1 = vld [vmem:[%s249_s26] sm:$0xf]  ;;  %s245_s11 = scalar_lea.vmem [#allocation7], %s437_s8  ;;  %s442_s14 = sshll.u32 %s704_s22, 3 }
  0x20   : > { %439 = vmatpush.msk.msra.mxu0 %vm262_vm0, %v250_v1  ;;  %s343_s17 = scalar_lea.hbm %s810_s5, %s442_s14  ;;  %s345_s23 = sshll.u32 %s245_s11, 4  ;;  %s346_s23 = int_to_ptr.vmem [resolvable:$true] %s345_s23 }
  0x21   : > { %440 = vmatmul.msk.f32.vlgmr.msra.gmra.mxu0 %vm258_vm1, %v251_v2  ;;  %s347_s25 = sshll.u32 %s343_s17, 4  ;;  %s333_s22 = scalar_lea.sflag [#allocation4], %s243_s7  ;;  %s348_s25 = int_to_ptr.hbm [resolvable:$true] %s347_s25 }
  0x22   : > { %s588_s26 = sshra.s32 %s348_s25, 4  ;;  %s589_s26 = int_to_ptr.hbm [resolvable:$true] %s588_s26 }
  0x23   : > { %512 = vset.pattern.permute.xlu1 %v649_v5  ;;  %s590_s30 = scalar_lea.hbm %s589_s26, 8  ;;  %p595_p3 = scmp.lt.s32.totalorder %s589_s26, %s810_s5 }
  0x24   : > { %310 = vperm.xlu1 %512, %v302_v3   ;;  %p591_p0 = scmp.ne.s32.totalorder %s589_s26, %s590_s30 }
  0x26   : > { %p592_p1 = pnand %p591_p0, %p721_p5 }
  0x28   : > { %p593_p2 = pneg %p592_p1 }
  0x8d   : > { %v306_v13 = vpop.permute.xlu1 %305 }
  0x8e   : > { %v256_v7 = vpop.permute.xlu0 %255 }
  0x96   : > { %v311_v15 = vpop.permute.xlu1 %310 }
  0x9e   : > { %v283_v8 = vpop.f32.mrf.mxu0 }
  0x9f   : > { %v284_v9 = vadd.f32 %v283_v8, %v256_v7 }
  0xa1   : > { %vm286_vm2 = vcmp.ge.f32.partialorder %v284_v9, 0.0  ;;  %v287_v10 = vmul.f32 0.01, %v284_v9 }
  0xa3   : > { %v288_v11 = vsel %vm286_vm2, %v284_v9, %v287_v10 }
  0xa4   : > { %297 = vrot.lane.b32.xlu2 %v288_v11, %s651_s9  ;;  %292 = vrot.lane.b32.xlu0 %v288_v11, %s652_s10  ;;  %290 = vst.msk [vmem:[%s245_s11] sm:$0xf] %vm289_vm3, %v288_v11  ;;  %v313_v19 = vmul.f32 %v311_v15, %v288_v11  ;;  %s594_s9 = scalar_lea.hbm %s810_s5, 16 }
  0xa5   : > { %p596_p4 = scmp.lt.s32.totalorder %s594_s9, %s590_s30 }
  0xa7   : > { %p597_p7 = por %p596_p4, %p595_p3 }
  0xa9   : > { %p598_p8 = pnand %p597_p7, %p593_p2 }
  0xac   : > { %316 = vperm.xlu2 %513, %v302_v3   ;;  %324 = vperm.xlu0 %510, %v321_v12  }
  0xfe   : > { %v298_v14 = vpop.permute.xlu2 %297 }
  0xff   : > { %v301_v21 = vsel %vm300_vm5, %v298_v14, 0.0 }
 0x106   : > { %v317_v17 = vpop.permute.xlu2 %316 }
 0x107   : > { %v319_v22 = vmul.f32 %v317_v17, %v301_v21 }
 0x116   : > { %v293_v16 = vpop.permute.xlu0 %292 }
 0x117   : > { %v296_v18 = vsel %vm295_vm4, 0.0, %v293_v16 }
 0x118   : > { %v308_v20 = vmul.f32 %v306_v13, %v296_v18 }
 0x11a   : > { %v314_v23 = vadd.f32 %v313_v19, %v308_v20 }
 0x11c   : > { %v320_v24 = vadd.f32 %v319_v22, %v314_v23 }
 0x11e   : > { %v325_v25 = vpop.permute.xlu0 %324 }
 0x11f   : > { %v327_v26 = vadd.f32 %v325_v25, %v320_v24 }
 0x121   : > { %vm328_vm6 = vcmp.ge.f32.partialorder %v327_v26, 0.0  ;;  %v329_v27 = vmul.f32 0.01, %v327_v26 }
 0x123   : > { %v330_v28 = vsel %vm328_vm6, %v327_v26, %v329_v27 }
 0x124   : > { %331 = vst.msk [vmem:[%s245_s11 + $0x4] sm:$0xf] %vm289_vm3, %v330_v28 }
 0x125   : > { %601 = shalt.err (!%p598_p8)
}
 0x126   : > { %453 = dma.vmem_to_hbm [thread:$0]  (%p721_p5), %s346_s23, 128, %s348_s25, %s333_s22  }
 0x127 PF: > { %p470_p9 = scmp.ge.s32.totalorder %s644_s21, 2  ;;  %s359_s7 = sand.u32 1, %s632_s18  }
 0x128   : > { %s360_s11 = scalar_lea.sflag [#allocation4], %s359_s7 }
 0x129   : > { %p463_p10 = pnand %p470_p9, %p725_p6 }
 0x12b   : > { %p464_p11 = pneg %p463_p10 }
 0x12d   : > { %627 = dma.done.wait (%p464_p11), %s360_s11, 128  }
 0x12e   : > { %629 = vsyncadd (%p464_p11), %s360_s11, 4294967168  ;;  %p17_p12 = scmp.ge.s32.totalorder %s708_s24, 4   ;;  %s814_s18 = smov %s636_s19 }
 0x12f   : > { %s815_s19 = smov %s640_s20  ;;  %s816_s20 = smov %s719_s27 }
 0x130   : > { %s817_s21 = smov %s708_s24  ;;  %19 = sbr.rel (!%p17_p12) target bundleno = 5 (0x5), region = 84 }
 0x135   :  { %366 = vsyncpa [#allocation3], 1 }
 0x136   :  { %368 = vsyncpa [#allocation3 + $0x1], 1 }
 0x137   :  { %369 = vsyncpa [#allocation6], 1 }
 0x138   :  { %370 = vsyncpa [#allocation4], 1 }
 0x139   :  { %372 = vsyncpa [#allocation4 + $0x1], 1 }

</bundles_post_ra>
